<compile_context>
chip_gen: v6e
topology: v6e:2x2x1
jax: 0.10.0
libtpu: 0.0.40
codegen_flags: <defaults>
</compile_context>

<pallas_src>
import functools

import jax
import jax.numpy as jnp
from jax import lax
from jax.experimental import pallas as pl
from jax.experimental.pallas import tpu as pltpu

NEG_SLOPE = 0.01


def _leaky(v):
    # leaky_relu(v) == max(v, slope*v) for slope in (0, 1): single VALU op.
    return jnp.maximum(v, NEG_SLOPE * v)


# ---------------------------------------------------------------------------
# Single-step kernel (fused dual-Linear + LeakyReLU, no host-side concat).
# Packed weight row layout is [h rows | x rows]; columns [hidden | y | pad].
# ---------------------------------------------------------------------------
def _rnn_cell_kernel(x_ref, h_ref, w_ref, b_ref, out_ref, *, hidden_dim):
    acc = jnp.dot(h_ref[...], w_ref[:hidden_dim, :],
                  preferred_element_type=jnp.float32)
    acc = acc + jnp.dot(x_ref[...], w_ref[hidden_dim:, :],
                        preferred_element_type=jnp.float32)
    acc = acc + b_ref[...].astype(jnp.float32)
    out_ref[...] = _leaky(acc).astype(out_ref.dtype)


def my_rnn_forward(x, h, packed, in_dim, hidden_dim):
    """One RNN cell step. x:(B,in_dim), h:(B,hidden_dim) or None.

    Prefer my_rnn_sequence for multi-step use: a host-side loop over this
    re-DMAs the full weight slab every step.
    """
    B = x.shape[0]
    w, b = packed                       # w:(D,N_pad), b:(1,N_pad)
    n_pad = w.shape[1]
    if h is None:
        h = jnp.zeros((B, hidden_dim), dtype=x.dtype)

    full = lambda shp: pl.BlockSpec(shp, lambda: tuple(0 for _ in shp),
                                    memory_space=pltpu.VMEM)

    out = pl.pallas_call(
        functools.partial(_rnn_cell_kernel, hidden_dim=hidden_dim),
        out_shape=jax.ShapeDtypeStruct((B, n_pad), x.dtype),
        in_specs=[full((B, in_dim)), full((B, hidden_dim)),
                  full(w.shape), full(b.shape)],
        out_specs=full((B, n_pad)),
    )(x, h, w, b)

    # Layout plumbing in plain JAX: hidden gate first, out gate second.
    h_new = out[:, :hidden_dim]
    y = out[:, hidden_dim:hidden_dim + in_dim]
    return y, h_new


# ---------------------------------------------------------------------------
# Sequence kernel: time-blocked grid, TB steps per grid iteration, weights and
# the gate-input scratch (carrying h) stay resident in VMEM.
# ---------------------------------------------------------------------------
def _rnn_seq_kernel(xs_ref, h0_ref, w_ref, b_ref, out_ref, hT_ref, gate_ref,
                    *, hidden_dim, time_block):
    t = pl.program_id(1)        # time-block index (carry axis, "arbitrary")

    @pl.when(t == 0)
    def _():
        # Reset the carried hidden state for this batch block.
        gate_ref[:, :hidden_dim] = h0_ref[...].astype(jnp.float32)

    # Hoisted: weight tile and broadcasted bias (JAX does not CSE broadcasts).
    w = w_ref[...]
    bias = jnp.broadcast_to(b_ref[...].astype(jnp.float32),
                            (gate_ref.shape[0], b_ref.shape[1]))

    def step(i, carry):
        # Gate-input layout [h | x]: copy this step's x into the trailing lanes.
        gate_ref[:, hidden_dim:] = xs_ref[i].astype(jnp.float32)
        # Single fused MXU pass over K = in_dim + hidden_dim.
        acc = jnp.dot(gate_ref[...], w, preferred_element_type=jnp.float32)
        act = _leaky(acc + bias)                       # (B_blk, N_pad)
        out_ref[i] = act.astype(out_ref.dtype)
        # Hidden gate occupies the leading lanes -> carry with no lane shift.
        gate_ref[:, :hidden_dim] = act[:, :hidden_dim]
        return carry

    lax.fori_loop(0, time_block, step, 0, unroll=True)

    @pl.when(t == pl.num_programs(1) - 1)
    def _():
        hT_ref[...] = gate_ref[:, :hidden_dim].astype(hT_ref.dtype)


def _largest_divisor_leq(n, cap):
    cap = max(1, min(n, cap))
    for d in range(cap, 0, -1):
        if n % d == 0:
            return d
    return 1


def my_rnn_sequence(xs, h0, packed, in_dim, hidden_dim,
                    time_block=16, batch_block=None):
    """Run the cell over xs:(T,B,in_dim). Returns ys:(T,B,in_dim), h:(B,hidden)."""
    T, B, _ = xs.shape
    w, b = packed
    D, n_pad = w.shape
    if h0 is None:
        h0 = jnp.zeros((B, hidden_dim), dtype=xs.dtype)

    tb = _largest_divisor_leq(T, time_block)
    if batch_block is None:
        # Split the batch over 2 TCs (v7x megacore) when it stays sublane-aligned.
        batch_block = B // 2 if (B % 16 == 0 and B >= 16) else B
    bb = _largest_divisor_leq(B, batch_block)
    n_batch, n_time = B // bb, T // tb

    io_bytes = jnp.dtype(xs.dtype).itemsize
    w_bytes = jnp.dtype(w.dtype).itemsize
    est = (2 * tb * bb * (in_dim + n_pad) * io_bytes      # xs + out, double buffered
           + 2 * (D + 1) * n_pad * w_bytes                # weight + bias buffers
           + 4 * bb * hidden_dim * io_bytes               # h0 + hT
           + bb * D * 4)                                  # gate scratch (f32)
    vmem_limit = int(min(64 * 2 ** 20, max(32 * 2 ** 20, 2 * est)))

    grid_spec = pltpu.PrefetchScalarGridSpec(
        num_scalar_prefetch=0,
        grid=(n_batch, n_time),
        in_specs=[
            pl.BlockSpec((tb, bb, in_dim), lambda bi, ti: (ti, bi, 0)),
            pl.BlockSpec((bb, hidden_dim), lambda bi, ti: (bi, 0)),
            pl.BlockSpec((D, n_pad), lambda bi, ti: (0, 0)),   # invariant: DMA'd once
            pl.BlockSpec((1, n_pad), lambda bi, ti: (0, 0)),   # invariant: DMA'd once
        ],
        out_specs=(
            pl.BlockSpec((tb, bb, n_pad), lambda bi, ti: (ti, bi, 0)),
            pl.BlockSpec((bb, hidden_dim), lambda bi, ti: (bi, 0)),  # resident over t
        ),
        scratch_shapes=[pltpu.VMEM((bb, D), jnp.float32)],   # gate input [h | x]
    )

    outs, h_last = pl.pallas_call(
        functools.partial(_rnn_seq_kernel, hidden_dim=hidden_dim, time_block=tb),
        out_shape=(jax.ShapeDtypeStruct((T, B, n_pad), xs.dtype),
                   jax.ShapeDtypeStruct((B, hidden_dim), xs.dtype)),
        grid_spec=grid_spec,
        compiler_params=pltpu.CompilerParams(
            dimension_semantics=("parallel", "arbitrary"),   # batch ||, time = carry
            vmem_limit_bytes=vmem_limit),
    )(xs, h0, w, b)

    ys = outs[:, :, hidden_dim:hidden_dim + in_dim]
    return ys, h_last


# ---------------------------------------------------------------------------
# Parameters
# ---------------------------------------------------------------------------
def init_params(key, in_dim, hidden_dim, dtype=jnp.float32):
    """Deterministic init matching nn.Linear's U(-1/sqrt(fan_in), +1/sqrt(fan_in))."""
    D = in_dim + hidden_dim
    k1, k2, k3, k4 = jax.random.split(key, 4)
    bound = 1.0 / (D ** 0.5)
    wy_t = jax.random.uniform(k1, (D, in_dim), dtype, -bound, bound)   # rows: [x | h]
    by = jax.random.uniform(k2, (in_dim,), dtype, -bound, bound)
    wh_t = jax.random.uniform(k3, (D, hidden_dim), dtype, -bound, bound)
    bh = jax.random.uniform(k4, (hidden_dim,), dtype, -bound, bound)
    return wy_t, by, wh_t, bh


def pack_params(params, in_dim, hidden_dim, param_dtype=None):
    """Fuse the two Linear layers into one lane-padded weight/bias slab.

    Row layout (gate-input order used by the kernels): [h rows | x rows].
    Column layout: [hidden_gate (hidden_dim) | out_gate (in_dim) | zero pad].
    Optionally cast params (e.g. bf16) for 2x MXU throughput / half VMEM.
    """
    wy_t, by, wh_t, bh = params
    n = hidden_dim + in_dim
    n_pad = ((n + 127) // 128) * 128
    w = jnp.concatenate([wh_t, wy_t], axis=1)                     # (D, n), rows [x|h]
    w = jnp.concatenate([w[in_dim:, :], w[:in_dim, :]], axis=0)   # rows -> [h|x]
    b = jnp.concatenate([bh, by], axis=0).reshape(1, n)
    if n_pad > n:
        w = jnp.pad(w, ((0, 0), (0, n_pad - n)))
        b = jnp.pad(b, ((0, 0), (0, n_pad - n)))
    if param_dtype is not None:
        w = w.astype(param_dtype)
        b = b.astype(param_dtype)
    return w, b


# ---------------------------------------------------------------------------
# Pure-JAX reference
# ---------------------------------------------------------------------------
def _reference_step(x, h, params):
    wy_t, by, wh_t, bh = params
    if h is None:
        h = jnp.zeros((x.shape[0], wh_t.shape[1]), dtype=x.dtype)
    gi = jnp.concatenate([x, h], axis=1)
    lr = lambda v: jnp.where(v > 0, v, NEG_SLOPE * v)
    return lr(gi @ wy_t + by), lr(gi @ wh_t + bh)


def _reference_seq(xs, h, params):
    ys = []
    for t in range(xs.shape[0]):
        y, h = _reference_step(xs[t], h, params)
        ys.append(y)
    return jnp.stack(ys), h


if __name__ == "__main__":
    B, in_dim, hidden_dim, T = 8, 32, 64, 16

    key = jax.random.PRNGKey(0)
    kx, ks, kp = jax.random.split(key, 3)
    x = jax.random.normal(kx, (B, in_dim), jnp.float32)
    xs = jax.random.normal(ks, (T, B, in_dim), jnp.float32)
    params = init_params(kp, in_dim, hidden_dim)
    packed = pack_params(params, in_dim, hidden_dim)

    # ---- single step (h=None, same as the PyTorch default path) -----------
    y, h_new = my_rnn_forward(x, None, packed, in_dim, hidden_dim)
    jax.block_until_ready((y, h_new))
    y_ref, h_ref = _reference_step(x, None, params)
    assert y.shape == (B, in_dim) and h_new.shape == (B, hidden_dim)
    assert jnp.allclose(y, y_ref, atol=1e-4, rtol=1e-4)
    assert jnp.allclose(h_new, h_ref, atol=1e-4, rtol=1e-4)

    # ---- fused, time-blocked in-kernel loop (4 time blocks x 4 steps) -----
    ys, h_T = my_rnn_sequence(xs, None, packed, in_dim, hidden_dim, time_block=4)
    jax.block_until_ready((ys, h_T))
    ys_ref, hT_ref = _reference_seq(xs, None, params)
    assert ys.shape == (T, B, in_dim) and h_T.shape == (B, hidden_dim)
    assert jnp.allclose(ys, ys_ref, atol=1e-4, rtol=1e-4)
    assert jnp.allclose(h_T, hT_ref, atol=1e-4, rtol=1e-4)

    print("KERNEL_OK")
</pallas_src>

<mosaic_0001>
module attributes {stable_mosaic.version = 11 : i64} {
  func.func @_rnn_cell_kernel(%arg0: memref<8x32xf32, #tpu.memory_space<vmem>>, %arg1: memref<8x64xf32, #tpu.memory_space<vmem>>, %arg2: memref<96x128xf32, #tpu.memory_space<vmem>>, %arg3: memref<1x128xf32, #tpu.memory_space<vmem>>, %arg4: memref<8x128xf32, #tpu.memory_space<vmem>>) attributes {dimension_semantics = [], scalar_prefetch = 0 : i64, scratch_operands = 0 : i64, tpu.core_type = #tpu.core_type<tc>} {
    %c0 = arith.constant 0 : index
    %c0_0 = arith.constant 0 : index
    %0 = vector.load %arg1[%c0, %c0_0] : memref<8x64xf32, #tpu.memory_space<vmem>>, vector<8x64xf32>
    %c0_1 = arith.constant 0 : index
    %c0_2 = arith.constant 0 : index
    %1 = vector.load %arg2[%c0_1, %c0_2] : memref<96x128xf32, #tpu.memory_space<vmem>>, vector<64x128xf32>
    %cst = arith.constant dense<0.000000e+00> : vector<8x128xf32>
    %2 = tpu.matmul %0, %1, %cst {dimension_numbers = #tpu.dot_dimension_numbers<[1], [0], [0], [1], [0, 0, 1, 1], [], []>} : vector<8x64xf32>, vector<64x128xf32>, vector<8x128xf32> -> vector<8x128xf32>
    %c0_3 = arith.constant 0 : index
    %c0_4 = arith.constant 0 : index
    %3 = vector.load %arg0[%c0_3, %c0_4] : memref<8x32xf32, #tpu.memory_space<vmem>>, vector<8x32xf32>
    %c64 = arith.constant 64 : index
    %c0_5 = arith.constant 0 : index
    %4 = vector.load %arg2[%c64, %c0_5] : memref<96x128xf32, #tpu.memory_space<vmem>>, vector<32x128xf32>
    %cst_6 = arith.constant dense<0.000000e+00> : vector<8x128xf32>
    %5 = tpu.matmul %3, %4, %cst_6 {dimension_numbers = #tpu.dot_dimension_numbers<[1], [0], [0], [1], [0, 0, 1, 1], [], []>} : vector<8x32xf32>, vector<32x128xf32>, vector<8x128xf32> -> vector<8x128xf32>
    %6 = arith.addf %2, %5 : vector<8x128xf32>
    %c0_7 = arith.constant 0 : index
    %c0_8 = arith.constant 0 : index
    %7 = vector.load %arg3[%c0_7, %c0_8] : memref<1x128xf32, #tpu.memory_space<vmem>>, vector<1x128xf32>
    %8 = vector.broadcast %7 : vector<1x128xf32> to vector<8x128xf32>
    %9 = arith.addf %6, %8 : vector<8x128xf32>
    %cst_9 = arith.constant 0.00999999977 : f32
    %10 = vector.broadcast %cst_9 : f32 to vector<8x128xf32>
    %11 = arith.mulf %10, %9 : vector<8x128xf32>
    %12 = arith.maximumf %9, %11 : vector<8x128xf32>
    %c0_10 = arith.constant 0 : index
    %c0_11 = arith.constant 0 : index
    %13 = vector.load %arg4[%c0_10, %c0_11] : memref<8x128xf32, #tpu.memory_space<vmem>>, vector<8x128xf32>
    tpu.vector_store %arg4[%c0_10, %c0_11], %12 {strides = array<i32>} : memref<8x128xf32, #tpu.memory_space<vmem>>, vector<8x128xf32>,
    return
  }
}

</mosaic_0001>

<bundles_post_ra>
// kernel: tpu_custom_call.1
= control target key start
LH: loop header
LB: loop body
LE: loop exit
PB: predicated region body
PF: predicated region fallthrough
CT: control target
= control target key end

     0   :  { %9 = vsyncpa [#allocation3], 0  ;;  %s433_s0 = inlined_call_operand.hbm [shape: f32[8,32], index: 0, kind: input, shape index: {}]   ;;  %s434_s1 = inlined_call_operand.hbm [shape: f32[8,64], index: 1, kind: input, shape index: {}]   ;;  %s435_s2 = inlined_call_operand.hbm [shape: f32[96,128], index: 2, kind: input, shape index: {}]   ;;  %s436_s3 = inlined_call_operand.vmem [shape: f32[1,128], index: 3, kind: input, shape index: {}]   ;;  %s437_s4 = inlined_call_operand.hbm [shape: f32[8,128], index: 4, kind: output, shape index: {}]  }
   0x1   :  { %10 = vsyncpa [#allocation6], 0 }
   0x2   :  { %11 = vsyncpa [#allocation4], 0  ;;  %s385_s15 = smov [#allocation5]   ;;  %s386_s17 = smov [#allocation2]  }
   0x3   :  { %s28_s16 = sshll.u32 %s385_s15, 4  ;;  %s18_s18 = sshll.u32 %s386_s17, 4  ;;  %s29_s16 = int_to_ptr.vmem [resolvable:$true] %s28_s16  ;;  %s19_s18 = int_to_ptr.vmem [resolvable:$true] %s18_s18 }
   0x4   :  { %s307_s19 = scalar_lea.vmem %s29_s16, 128  ;;  %p312_p1 = scmp.lt.s32.totalorder %s29_s16, %s29_s16 }
   0x5   :  { %p308_p0 = scmp.ne.s32.totalorder %s29_s16, %s307_s19  ;;  %p313_p2 = scmp.lt.s32.totalorder %s307_s19, %s307_s19 }
   0x7   :  { %p314_p3 = por %p313_p2, %p312_p1 }
   0x9   :  { %p315_p4 = pnand %p314_p3, %p308_p0 }
   0xb   :  { %318 = shalt.err (!%p315_p4)
}
   0xc   :  { %31 = dma.hbm_to_vmem [thread:$0]  %s434_s1, 128, %s29_s16, [#allocation6]  }
   0xd   :  { %s327_s22 = scalar_lea.vmem %s19_s18, 128  ;;  %p332_p6 = scmp.lt.s32.totalorder %s19_s18, %s19_s18 }
   0xe   :  { %p328_p5 = scmp.ne.s32.totalorder %s19_s18, %s327_s22  ;;  %p333_p7 = scmp.lt.s32.totalorder %s327_s22, %s327_s22 }
  0x10   :  { %p334_p8 = por %p333_p7, %p332_p6 }
  0x12   :  { %p335_p9 = pnand %p334_p8, %p328_p5 }
  0x14   :  { %338 = shalt.err (!%p335_p9)
}
  0x15   :  { %21 = dma.hbm_to_vmem [thread:$0]  %s433_s0, 128, %s19_s18, [#allocation3]  }
  0x16   :  { %s387_s25 = smov [#allocation7]  }
  0x17   :  { %s37_s26 = sshll.u32 %s387_s25, 4  ;;  %s38_s26 = int_to_ptr.vmem [resolvable:$true] %s37_s26 }
  0x18   :  { %s347_s27 = scalar_lea.vmem %s38_s26, 1536  ;;  %p352_p11 = scmp.lt.s32.totalorder %s38_s26, %s38_s26 }
  0x19   :  { %p348_p10 = scmp.ne.s32.totalorder %s38_s26, %s347_s27  ;;  %p353_p12 = scmp.lt.s32.totalorder %s347_s27, %s347_s27 }
  0x1b   :  { %p354_p13 = por %p353_p12, %p352_p11 }
  0x1d   :  { %p355_p0 = pnand %p354_p13, %p348_p10 }
  0x1f   :  { %358 = shalt.err (!%p355_p0)
}
  0x20   :  { %s388_s1 = smov 128   ;;  %s389_s28 = smov 8  }
  0x21   :  { %43 = dma.hbm_to_vmem [thread:$0]  %s435_s2, 1536, %s38_s26, [#allocation6], %s388_s1, %s388_s1, %s389_s28  }
  0x22   :  { %379 = dma.done.wait [#allocation3], 128  }
  0x23   :  { %380 = vsyncadd [#allocation3], 4294967168 }
  0x24   :  { %381 = dma.done.wait [#allocation6], 1664  }
  0x25   :  { %382 = vsyncadd [#allocation6], 4294965632  ;;  %v390_v0 = vmov 0.0   ;;  %vm391_vm0 = vmmov 0   ;;  %v63_v1 = vld [vmem:[#allocation7 + $0x38] sm:$0xff]  ;;  %v62_v2 = vld [vmem:[#allocation7 + $0x30] sm:$0xff] }
  0x26   :  { %272 = vmatprep.subr.mxu1 %v390_v0  ;;  %261 = vmatprep.subr.mxu0 %v390_v0  ;;  %v68_v3 = vld [vmem:[#allocation7 + $0x58] sm:$0xff]  ;;  %v67_v4 = vld [vmem:[#allocation7 + $0x50] sm:$0xff]  ;;  %v61_v5 = vld [vmem:[#allocation7 + $0x28] sm:$0xff]  ;;  %vm69_vm1 = vcmask 261120   ;;  %vm143_vm2 = vcmask 523264   ;;  %s392_s5 = smov [#allocation8]  }
  0x27   :  { %269 = vmatprep.mubr.msk.f32.mxu0 %vm391_vm0, %v390_v0  ;;  %288 = vmatprep.mubr.msk.f32.mxu1 %vm391_vm0, %v390_v0  ;;  %v66_v6 = vld [vmem:[#allocation7 + $0x48] sm:$0xff]  ;;  %v60_v7 = vld [vmem:[#allocation7 + $0x20] sm:$0xff]  ;;  %v59_v9 = vld [vmem:[#allocation7 + $0x18] sm:$0xff]  ;;  %s234_s6 = sshll.u32 %s392_s5, 4  ;;  %s235_s6 = int_to_ptr.vmem [resolvable:$true] %s234_s6 }
  0x28   :  { %273 = vmatpush3.msra.mxu1 %v63_v1  ;;  %262 = vmatpush3.msra.mxu0 %v68_v3  ;;  %v65_v8 = vld [vmem:[#allocation7 + $0x40] sm:$0xff]  ;;  %v64_v10 = vld [vmem:[#allocation2] sm:$0xff]  ;;  %v57_v12 = vld [vmem:[#allocation7 + $0x8] sm:$0xff]  ;;  %s359_s7 = scalar_lea.vmem %s235_s6, 128  ;;  %p364_p2 = scmp.lt.s32.totalorder %s235_s6, %s235_s6 }
  0x29   :  { %274 = vmatprep.subr.mxu1 %v390_v0  ;;  %263 = vmatprep.subr.mxu0 %v390_v0  ;;  %v58_v11 = vld [vmem:[#allocation7 + $0x10] sm:$0xff]  ;;  %v56_v13 = vld [vmem:[#allocation7] sm:$0xff]  ;;  %v55_v14 = vld [vmem:[#allocation5] sm:$0xff]  ;;  %p360_p1 = scmp.ne.s32.totalorder %s235_s6, %s359_s7  ;;  %p365_p3 = scmp.lt.s32.totalorder %s359_s7, %s359_s7 }
  0x2a   :  { %275 = vmatpush3.msra.mxu1 %v62_v2  ;;  %264 = vmatpush3.msra.mxu0 %v67_v4  ;;  %v246_v18 = vld [vmem:[%s436_s3] ss:$0 sm:$0xff] }
  0x2b   :  { %276 = vmatprep.subr.mxu1 %v390_v0  ;;  %265 = vmatprep.subr.mxu0 %v390_v0  ;;  %p366_p4 = por %p365_p3, %p364_p2 }
  0x2c   :  { %277 = vmatpush3.msra.mxu1 %v61_v5  ;;  %266 = vmatpush3.msra.mxu0 %v66_v6 }
  0x2d   :  { %278 = vmatprep.subr.mxu1 %v390_v0  ;;  %267 = vmatprep.subr.mxu0 %v390_v0  ;;  %p367_p5 = pnand %p366_p4, %p360_p1 }
  0x2e   :  { %279 = vmatpush3.msra.mxu1 %v60_v7  ;;  %268 = vmatpush3.msra.mxu0 %v65_v8 }
  0x2f   :  { %280 = vmatprep.subr.mxu1 %v390_v0  ;;  %270 = vmatmul.mubr.msk.f32.vlgmr.msra.gmra.mxu0 %vm69_vm1, %v64_v10 }
  0x30   :  { %281 = vmatpush3.msra.mxu1 %v59_v9 }
  0x31   :  { %282 = vmatprep.subr.mxu1 %v390_v0 }
  0x32   :  { %283 = vmatpush3.msra.mxu1 %v58_v11 }
  0x33   :  { %284 = vmatprep.subr.mxu1 %v390_v0 }
  0x34   :  { %285 = vmatpush3.msra.mxu1 %v57_v12 }
  0x35   :  { %286 = vmatprep.subr.mxu1 %v390_v0 }
  0x36   :  { %287 = vmatpush3.msra.mxu1 %v56_v13 }
  0x37   :  { %289 = vmatmul.mubr.msk.f32.vlgmr.msra.gmra.mxu1 %vm143_vm2, %v55_v14 }
  0xef   :  { %v139_v15 = vpop.f32.mrf.mxu0 }
  0xf1   :  { %v271_v16 = vpop.f32.mrf.mxu0 }
  0xf7   :  { %v213_v17 = vpop.f32.mrf.mxu1 }
  0xf8   :  { %v214_v19 = vadd.f32 %v213_v17, %v139_v15 }
  0xf9   :  { %v290_v20 = vpop.f32.mrf.mxu1 }
  0xfa   :  { %v224_v21 = vadd.f32 %v246_v18, %v214_v19 }
  0xfc   :  { %v225_v22 = vmul.f32 0.01, %v224_v21 }
  0xfe   :  { %v226_v23 = vmax.f32 %v224_v21, %v225_v22 }
 0x100   :  { %227 = vst [vmem:[#allocation8] sm:$0xff] %v226_v23 }
 0x101   :  { %370 = shalt.err (!%p367_p5)
}
 0x102   :  { %237 = dma.vmem_to_hbm [thread:$0]  %s235_s6, 128, %s437_s4, [#allocation4]  }
 0x103   :  { %383 = dma.done.wait [#allocation4], 128  }
 0x104   :  { %384 = vsyncadd [#allocation4], 4294967168 }
 0x105   :  { %241 = vsyncpa [#allocation3], 1 }
 0x106   :  { %242 = vsyncpa [#allocation6], 1 }
 0x107   :  { %243 = vsyncpa [#allocation4], 1 }

</bundles_post_ra>
